<compile_context>
chip_gen: v7x
topology: tpu7x:2x2x1
jax: 0.10.0
libtpu: 0.0.40
codegen_flags: <defaults>
</compile_context>

<pallas_src>
import functools

import jax
import jax.numpy as jnp
from jax.experimental import pallas as pl
from jax.experimental.pallas import tpu as pltpu

LANE = 128            # lane width
SUBLANE = 8           # f32 sublanes per vreg
TM_MAX = 4096         # max rows per block -> 2 MiB/input/block in f32
NUM_PARTIALS = 2      # parallel grid axis (v7x: one per TensorCore)

VARIANCE_WEIGHT = 0.15
DIVERSITY_WEIGHT = 0.05
MIN_VARIANCE = 0.5
MIN_RANGE = 2.0


def _partials_kernel(shift_ref, pred_ref, targ_ref, out_ref,
                     ss_acc, sa_acc, sp_acc, sp2_acc, mx_acc, mn_acc,
                     *, n_total, blocks_per_core):
    c = pl.program_id(0)           # partial index        ("parallel")
    b = pl.program_id(1)           # block within partial ("arbitrary")
    n_b = pl.num_programs(1)

    # ---- init per-partial vreg-shaped accumulators --------------------------
    @pl.when(b == 0)
    def _():
        ss_acc[...] = jnp.zeros_like(ss_acc)            # sum((p - t)^2)
        sa_acc[...] = jnp.zeros_like(sa_acc)            # sum(|p - t|)
        sp_acc[...] = jnp.zeros_like(sp_acc)            # sum(p - shift)
        sp2_acc[...] = jnp.zeros_like(sp2_acc)          # sum((p - shift)^2)
        mx_acc[...] = jnp.full_like(mx_acc, -jnp.inf)   # max(p - shift)
        mn_acc[...] = jnp.full_like(mn_acc, jnp.inf)    # min(p - shift)

    p = pred_ref[...].astype(jnp.float32)
    t = targ_ref[...].astype(jnp.float32)
    tm, lanes = p.shape
    folds = tm // SUBLANE
    blk_elems = tm * lanes

    shift = shift_ref[0]           # scalar f32 from SMEM
    d = p - t
    ps = p - shift                 # variance / range are shift-invariant

    def fold(x, op):
        # (tm,128) -> (tm//8, 8, 128); reduce the vreg-enumerating axis.
        # Pure per-vreg VPU work; no cross-lane (XLU) traffic on the hot path.
        return op(x.reshape(folds, SUBLANE, lanes), axis=0)

    def accumulate(dd, ad, s1, s2, pmx, pmn):
        ss_acc[...] += fold(dd, jnp.sum)
        sa_acc[...] += fold(ad, jnp.sum)
        sp_acc[...] += fold(s1, jnp.sum)
        sp2_acc[...] += fold(s2, jnp.sum)
        mx_acc[...] = jnp.maximum(mx_acc[...], fold(pmx, jnp.max))
        mn_acc[...] = jnp.minimum(mn_acc[...], fold(pmn, jnp.min))

    # Logical (unclamped) global block index; the input index_map clamps the
    # actual DMA to the last real block, and masking below neutralizes any
    # surplus step as well as the ragged tail / pad / OOB-garbage region.
    g = c * blocks_per_core + b
    full_block = (g + 1) * blk_elems <= n_total

    # ---- hot path: mask-free ------------------------------------------------
    @pl.when(full_block)
    def _():
        accumulate(d * d, jnp.abs(d), ps, ps * ps, ps, ps)

    # ---- ragged tail / surplus blocks: mask everything ----------------------
    @pl.when(jnp.logical_not(full_block))
    def _():
        row = jax.lax.broadcasted_iota(jnp.int32, p.shape, 0)
        col = jax.lax.broadcasted_iota(jnp.int32, p.shape, 1)
        valid = (g * blk_elems + row * lanes + col) < n_total
        accumulate(jnp.where(valid, d * d, 0.0),
                   jnp.where(valid, jnp.abs(d), 0.0),
                   jnp.where(valid, ps, 0.0),
                   jnp.where(valid, ps * ps, 0.0),
                   jnp.where(valid, ps, -jnp.inf),
                   jnp.where(valid, ps, jnp.inf))

    # ---- per-partial finalize: dump raw accumulator slabs --------------------
    @pl.when(b == n_b - 1)
    def _():
        out_ref[0, 0] = ss_acc[...]
        out_ref[0, 1] = sa_acc[...]
        out_ref[0, 2] = sp_acc[...]
        out_ref[0, 3] = sp2_acc[...]
        out_ref[0, 4] = mx_acc[...]
        out_ref[0, 5] = mn_acc[...]


def advanced_variance_loss(predictions, targets, *, block_rows=None):
    """Pallas implementation of AdvancedVarianceLoss.forward."""
    assert predictions.shape == targets.shape
    assert predictions.dtype == targets.dtype
    n_total = int(predictions.size)

    p_flat = predictions.reshape(-1)
    t_flat = targets.reshape(-1)

    # Cheap data-dependent shift (first element) for a numerically robust
    # one-pass variance; one-element slice, negligible HBM traffic.
    shift = p_flat[:1].astype(jnp.float32)

    # Lane-dense layout: pad only up to one row-group of the native tile
    # (8 sublanes for 32-bit, 16 for 16-bit, ...), never up to the block size.
    sub_mult = SUBLANE * max(1, 4 // jnp.dtype(predictions.dtype).itemsize)
    chunk = sub_mult * LANE
    rows = pl.cdiv(n_total, chunk) * sub_mult
    pad = rows * LANE - n_total
    if pad:
        p_flat = jnp.pad(p_flat, (0, pad))
        t_flat = jnp.pad(t_flat, (0, pad))
    p2d = p_flat.reshape(rows, LANE)
    t2d = t_flat.reshape(rows, LANE)

    tm = min(TM_MAX if block_rows is None else block_rows, rows)
    assert tm % sub_mult == 0, (tm, sub_mult)
    n_blocks = pl.cdiv(rows, tm)                 # real row-blocks in the slab
    n_cores = min(NUM_PARTIALS, n_blocks)
    blocks_per_core = pl.cdiv(n_blocks, n_cores)
    g_last = n_blocks - 1

    def in_map(c, b):
        # Clamp so a partial's (at most one) surplus step re-reads the last
        # real block instead of DMA-ing out of bounds; it is masked in-kernel.
        return (jnp.minimum(c * blocks_per_core + b, g_last), 0)

    kernel = functools.partial(_partials_kernel, n_total=n_total,
                               blocks_per_core=blocks_per_core)

    partials = pl.pallas_call(
        kernel,
        out_shape=jax.ShapeDtypeStruct((n_cores, 6, SUBLANE, LANE),
                                       jnp.float32),
        grid_spec=pltpu.PrefetchScalarGridSpec(
            num_scalar_prefetch=0,
            grid=(n_cores, blocks_per_core),
            in_specs=[
                pl.BlockSpec(memory_space=pltpu.MemorySpace.SMEM),  # shift
                pl.BlockSpec((tm, LANE), in_map),
                pl.BlockSpec((tm, LANE), in_map),
            ],
            out_specs=pl.BlockSpec((1, 6, SUBLANE, LANE),
                                   lambda c, b: (c, 0, 0, 0)),
            scratch_shapes=[pltpu.VMEM((SUBLANE, LANE), jnp.float32)] * 6,
        ),
        compiler_params=pltpu.CompilerParams(
            dimension_semantics=("parallel", "arbitrary")),
    )(shift, p2d, t2d)

    # ---- tiny combine + 20-flop finalize in plain JAX -----------------------
    n = jnp.float32(n_total)
    sum_sq = jnp.sum(partials[:, 0])
    sum_abs = jnp.sum(partials[:, 1])
    sum_ps = jnp.sum(partials[:, 2])
    sum_ps2 = jnp.sum(partials[:, 3])
    p_max = jnp.max(partials[:, 4])
    p_min = jnp.min(partials[:, 5])

    mse_loss = sum_sq / n
    l1_loss = sum_abs / n
    mean_ps = sum_ps / n
    # Unbiased variance (torch.var default, ddof=1), on shifted sums; clamp
    # the numerator at 0 so FP rounding can never yield a negative variance.
    pred_var = jnp.maximum(sum_ps2 - n * mean_ps * mean_ps, 0.0) / (n - 1.0)
    pred_range = p_max - p_min
    variance_penalty = jnp.exp(-pred_var / MIN_VARIANCE)
    diversity_penalty = jnp.exp(-pred_range / MIN_RANGE)
    total_loss = (0.7 * mse_loss + 0.1 * l1_loss
                  + VARIANCE_WEIGHT * variance_penalty
                  + DIVERSITY_WEIGHT * diversity_penalty)
    stats = {
        "mse_loss": mse_loss,
        "variance_penalty": variance_penalty,
        "diversity_penalty": diversity_penalty,
        "prediction_variance": pred_var,
        "prediction_range": pred_range,
    }
    return total_loss, stats


def _reference(predictions, targets):
    p = predictions.astype(jnp.float32)
    t = targets.astype(jnp.float32)
    mse = jnp.mean((p - t) ** 2)
    l1 = jnp.mean(jnp.abs(p - t))
    var = jnp.var(p, ddof=1)
    var_pen = jnp.exp(-var / MIN_VARIANCE)
    rng = jnp.max(p) - jnp.min(p)
    div_pen = jnp.exp(-rng / MIN_RANGE)
    total = (0.7 * mse + 0.1 * l1
             + VARIANCE_WEIGHT * var_pen + DIVERSITY_WEIGHT * div_pen)
    return total, var, rng


if __name__ == "__main__":
    key = jax.random.PRNGKey(0)
    k1, k2, k3, k4 = jax.random.split(key, 4)

    # predictions / targets in NCHW, as the PyTorch module would receive.
    predictions = jax.random.normal(k1, (2, 4, 16, 16), dtype=jnp.float32) * 1.5
    targets = jax.random.normal(k2, (2, 4, 16, 16), dtype=jnp.float32)

    total_loss, stats = advanced_variance_loss(predictions, targets)
    total_loss = jax.block_until_ready(total_loss)
    ref_total, ref_var, ref_rng = _reference(predictions, targets)
    ref_total = jax.block_until_ready(ref_total)
    assert jnp.allclose(total_loss, ref_total, rtol=1e-5, atol=1e-5), (
        total_loss, ref_total)
    assert jnp.allclose(stats["prediction_variance"], ref_var,
                        rtol=1e-4, atol=1e-5)
    assert jnp.allclose(stats["prediction_range"], ref_rng,
                        rtol=1e-5, atol=1e-5)

    # Ragged / masked path: size not a multiple of 1024, mean offset, and a
    # small block_rows so the grid has several blocks per partial.
    p2 = jax.random.normal(k3, (3, 5, 17, 19), dtype=jnp.float32) + 2.5
    t2 = jax.random.normal(k4, (3, 5, 17, 19), dtype=jnp.float32)
    tl2, st2 = advanced_variance_loss(p2, t2, block_rows=8)
    tl2 = jax.block_until_ready(tl2)
    ref2_total, ref2_var, ref2_rng = _reference(p2, t2)
    ref2_total = jax.block_until_ready(ref2_total)
    assert jnp.allclose(tl2, ref2_total, rtol=1e-5, atol=1e-5), (
        tl2, ref2_total)
    assert jnp.allclose(st2["prediction_variance"], ref2_var,
                        rtol=1e-4, atol=1e-5)
    assert jnp.allclose(st2["prediction_range"], ref2_rng,
                        rtol=1e-5, atol=1e-5)

    print("KERNEL_OK")
</pallas_src>

<mosaic_0001>
module attributes {stable_mosaic.version = 11 : i64} {
  func.func @_partials_kernel(%arg0: i32, %arg1: i32, %arg2: memref<1xf32, #tpu.memory_space<smem>>, %arg3: memref<16x128xf32, #tpu.memory_space<vmem>>, %arg4: memref<16x128xf32, #tpu.memory_space<vmem>>, %arg5: memref<1x6x8x128xf32, #tpu.memory_space<vmem>>, %arg6: memref<8x128xf32, #tpu.memory_space<vmem>>, %arg7: memref<8x128xf32, #tpu.memory_space<vmem>>, %arg8: memref<8x128xf32, #tpu.memory_space<vmem>>, %arg9: memref<8x128xf32, #tpu.memory_space<vmem>>, %arg10: memref<8x128xf32, #tpu.memory_space<vmem>>, %arg11: memref<8x128xf32, #tpu.memory_space<vmem>>) attributes {dimension_semantics = [#tpu.dimension_semantics<parallel>, #tpu.dimension_semantics<arbitrary>], iteration_bounds = array<i64: 1, 1>, scalar_prefetch = 0 : i64, scratch_operands = 6 : i64, tpu.core_type = #tpu.core_type<tc>, window_params = [{transform_indices = @transform_0, window_bounds = array<i64: 1>}, {transform_indices = @transform_1, window_bounds = array<i64: 16, 128>}, {transform_indices = @transform_2, window_bounds = array<i64: 16, 128>}, {transform_indices = @transform_3, window_bounds = array<i64: 1, 6, 8, 128>}]} {
    %c0_i32 = arith.constant 0 : i32
    %0 = arith.cmpi eq, %arg1, %c0_i32 : i32
    %1 = arith.extui %0 : i1 to i32
    %c0_i32_0 = arith.constant 0 : i32
    %2 = arith.cmpi ne, %1, %c0_i32_0 : i32
    scf.if %2 {
      %cst = arith.constant 0.000000e+00 : f32
      %22 = vector.broadcast %cst : f32 to vector<8x128xf32>
      %c0_11 = arith.constant 0 : index
      %c0_12 = arith.constant 0 : index
      %23 = vector.load %arg6[%c0_11, %c0_12] : memref<8x128xf32, #tpu.memory_space<vmem>>, vector<8x128xf32>
      tpu.vector_store %arg6[%c0_11, %c0_12], %22 {strides = array<i32>} : memref<8x128xf32, #tpu.memory_space<vmem>>, vector<8x128xf32>,
      %cst_13 = arith.constant 0.000000e+00 : f32
      %24 = vector.broadcast %cst_13 : f32 to vector<8x128xf32>
      %c0_14 = arith.constant 0 : index
      %c0_15 = arith.constant 0 : index
      %25 = vector.load %arg7[%c0_14, %c0_15] : memref<8x128xf32, #tpu.memory_space<vmem>>, vector<8x128xf32>
      tpu.vector_store %arg7[%c0_14, %c0_15], %24 {strides = array<i32>} : memref<8x128xf32, #tpu.memory_space<vmem>>, vector<8x128xf32>,
      %cst_16 = arith.constant 0.000000e+00 : f32
      %26 = vector.broadcast %cst_16 : f32 to vector<8x128xf32>
      %c0_17 = arith.constant 0 : index
      %c0_18 = arith.constant 0 : index
      %27 = vector.load %arg8[%c0_17, %c0_18] : memref<8x128xf32, #tpu.memory_space<vmem>>, vector<8x128xf32>
      tpu.vector_store %arg8[%c0_17, %c0_18], %26 {strides = array<i32>} : memref<8x128xf32, #tpu.memory_space<vmem>>, vector<8x128xf32>,
      %cst_19 = arith.constant 0.000000e+00 : f32
      %28 = vector.broadcast %cst_19 : f32 to vector<8x128xf32>
      %c0_20 = arith.constant 0 : index
      %c0_21 = arith.constant 0 : index
      %29 = vector.load %arg9[%c0_20, %c0_21] : memref<8x128xf32, #tpu.memory_space<vmem>>, vector<8x128xf32>
      tpu.vector_store %arg9[%c0_20, %c0_21], %28 {strides = array<i32>} : memref<8x128xf32, #tpu.memory_space<vmem>>, vector<8x128xf32>,
      %cst_22 = arith.constant 0xFF800000 : f32
      %30 = vector.broadcast %cst_22 : f32 to vector<8x128xf32>
      %c0_23 = arith.constant 0 : index
      %c0_24 = arith.constant 0 : index
      %31 = vector.load %arg10[%c0_23, %c0_24] : memref<8x128xf32, #tpu.memory_space<vmem>>, vector<8x128xf32>
      tpu.vector_store %arg10[%c0_23, %c0_24], %30 {strides = array<i32>} : memref<8x128xf32, #tpu.memory_space<vmem>>, vector<8x128xf32>,
      %cst_25 = arith.constant 0x7F800000 : f32
      %32 = vector.broadcast %cst_25 : f32 to vector<8x128xf32>
      %c0_26 = arith.constant 0 : index
      %c0_27 = arith.constant 0 : index
      %33 = vector.load %arg11[%c0_26, %c0_27] : memref<8x128xf32, #tpu.memory_space<vmem>>, vector<8x128xf32>
      tpu.vector_store %arg11[%c0_26, %c0_27], %32 {strides = array<i32>} : memref<8x128xf32, #tpu.memory_space<vmem>>, vector<8x128xf32>,
    } else {
    }
    %c0 = arith.constant 0 : index
    %c0_1 = arith.constant 0 : index
    %3 = vector.load %arg3[%c0, %c0_1] : memref<16x128xf32, #tpu.memory_space<vmem>>, vector<16x128xf32>
    %c0_2 = arith.constant 0 : index
    %c0_3 = arith.constant 0 : index
    %4 = vector.load %arg4[%c0_2, %c0_3] : memref<16x128xf32, #tpu.memory_space<vmem>>, vector<16x128xf32>
    %c0_4 = arith.constant 0 : index
    %5 = memref.load %arg2[%c0_4] : memref<1xf32, #tpu.memory_space<smem>>
    %6 = arith.subf %3, %4 : vector<16x128xf32>
    %7 = vector.broadcast %5 : f32 to vector<16x128xf32>
    %8 = arith.subf %3, %7 : vector<16x128xf32>
    %c1_i32 = arith.constant 1 : i32
    %9 = arith.muli %arg0, %c1_i32 : i32
    %10 = arith.addi %9, %arg1 : i32
    %c1_i32_5 = arith.constant 1 : i32
    %11 = arith.addi %10, %c1_i32_5 : i32
    %c2048_i32 = arith.constant 2048 : i32
    %12 = arith.muli %11, %c2048_i32 : i32
    %c2048_i32_6 = arith.constant 2048 : i32
    %13 = arith.cmpi sle, %12, %c2048_i32_6 : i32
    %14 = arith.extui %13 : i1 to i32
    %c0_i32_7 = arith.constant 0 : i32
    %15 = arith.cmpi ne, %14, %c0_i32_7 : i32
    scf.if %15 {
      %22 = arith.mulf %6, %6 : vector<16x128xf32>
      %23 = math.absf %6 : vector<16x128xf32>
      %24 = arith.mulf %8, %8 : vector<16x128xf32>
      %c0_11 = arith.constant 0 : index
      %c0_12 = arith.constant 0 : index
      %25 = vector.load %arg6[%c0_11, %c0_12] : memref<8x128xf32, #tpu.memory_space<vmem>>, vector<8x128xf32>
      %26 = vector.shape_cast %22 : vector<16x128xf32> to vector<2x8x128xf32>
      %cst = arith.constant dense<0.000000e+00> : vector<8x128xf32>
      %27 = vector.multi_reduction <add>, %26, %cst [0] : vector<2x8x128xf32> to vector<8x128xf32>
      %28 = arith.addf %25, %27 : vector<8x128xf32>
      %c0_13 = arith.constant 0 : index
      %c0_14 = arith.constant 0 : index
      %29 = vector.load %arg6[%c0_13, %c0_14] : memref<8x128xf32, #tpu.memory_space<vmem>>, vector<8x128xf32>
      tpu.vector_store %arg6[%c0_13, %c0_14], %28 {strides = array<i32>} : memref<8x128xf32, #tpu.memory_space<vmem>>, vector<8x128xf32>,
      %c0_15 = arith.constant 0 : index
      %c0_16 = arith.constant 0 : index
      %30 = vector.load %arg7[%c0_15, %c0_16] : memref<8x128xf32, #tpu.memory_space<vmem>>, vector<8x128xf32>
      %31 = vector.shape_cast %23 : vector<16x128xf32> to vector<2x8x128xf32>
      %cst_17 = arith.constant dense<0.000000e+00> : vector<8x128xf32>
      %32 = vector.multi_reduction <add>, %31, %cst_17 [0] : vector<2x8x128xf32> to vector<8x128xf32>
      %33 = arith.addf %30, %32 : vector<8x128xf32>
      %c0_18 = arith.constant 0 : index
      %c0_19 = arith.constant 0 : index
      %34 = vector.load %arg7[%c0_18, %c0_19] : memref<8x128xf32, #tpu.memory_space<vmem>>, vector<8x128xf32>
      tpu.vector_store %arg7[%c0_18, %c0_19], %33 {strides = array<i32>} : memref<8x128xf32, #tpu.memory_space<vmem>>, vector<8x128xf32>,
      %c0_20 = arith.constant 0 : index
      %c0_21 = arith.constant 0 : index
      %35 = vector.load %arg8[%c0_20, %c0_21] : memref<8x128xf32, #tpu.memory_space<vmem>>, vector<8x128xf32>
      %36 = vector.shape_cast %8 : vector<16x128xf32> to vector<2x8x128xf32>
      %cst_22 = arith.constant dense<0.000000e+00> : vector<8x128xf32>
      %37 = vector.multi_reduction <add>, %36, %cst_22 [0] : vector<2x8x128xf32> to vector<8x128xf32>
      %38 = arith.addf %35, %37 : vector<8x128xf32>
      %c0_23 = arith.constant 0 : index
      %c0_24 = arith.constant 0 : index
      %39 = vector.load %arg8[%c0_23, %c0_24] : memref<8x128xf32, #tpu.memory_space<vmem>>, vector<8x128xf32>
      tpu.vector_store %arg8[%c0_23, %c0_24], %38 {strides = array<i32>} : memref<8x128xf32, #tpu.memory_space<vmem>>, vector<8x128xf32>,
      %c0_25 = arith.constant 0 : index
      %c0_26 = arith.constant 0 : index
      %40 = vector.load %arg9[%c0_25, %c0_26] : memref<8x128xf32, #tpu.memory_space<vmem>>, vector<8x128xf32>
      %41 = vector.shape_cast %24 : vector<16x128xf32> to vector<2x8x128xf32>
      %cst_27 = arith.constant dense<0.000000e+00> : vector<8x128xf32>
      %42 = vector.multi_reduction <add>, %41, %cst_27 [0] : vector<2x8x128xf32> to vector<8x128xf32>
      %43 = arith.addf %40, %42 : vector<8x128xf32>
      %c0_28 = arith.constant 0 : index
      %c0_29 = arith.constant 0 : index
      %44 = vector.load %arg9[%c0_28, %c0_29] : memref<8x128xf32, #tpu.memory_space<vmem>>, vector<8x128xf32>
      tpu.vector_store %arg9[%c0_28, %c0_29], %43 {strides = array<i32>} : memref<8x128xf32, #tpu.memory_space<vmem>>, vector<8x128xf32>,
      %c0_30 = arith.constant 0 : index
      %c0_31 = arith.constant 0 : index
      %45 = vector.load %arg10[%c0_30, %c0_31] : memref<8x128xf32, #tpu.memory_space<vmem>>, vector<8x128xf32>
      %46 = vector.shape_cast %8 : vector<16x128xf32> to vector<2x8x128xf32>
      %cst_32 = arith.constant dense<0xFF800000> : vector<8x128xf32>
      %47 = vector.multi_reduction <maximumf>, %46, %cst_32 [0] : vector<2x8x128xf32> to vector<8x128xf32>
      %48 = arith.maximumf %45, %47 : vector<8x128xf32>
      %c0_33 = arith.constant 0 : index
      %c0_34 = arith.constant 0 : index
      %49 = vector.load %arg10[%c0_33, %c0_34] : memref<8x128xf32, #tpu.memory_space<vmem>>, vector<8x128xf32>
      tpu.vector_store %arg10[%c0_33, %c0_34], %48 {strides = array<i32>} : memref<8x128xf32, #tpu.memory_space<vmem>>, vector<8x128xf32>,
      %c0_35 = arith.constant 0 : index
      %c0_36 = arith.constant 0 : index
      %50 = vector.load %arg11[%c0_35, %c0_36] : memref<8x128xf32, #tpu.memory_space<vmem>>, vector<8x128xf32>
      %51 = vector.shape_cast %8 : vector<16x128xf32> to vector<2x8x128xf32>
      %cst_37 = arith.constant dense<0x7F800000> : vector<8x128xf32>
      %52 = vector.multi_reduction <minimumf>, %51, %cst_37 [0] : vector<2x8x128xf32> to vector<8x128xf32>
      %53 = arith.minimumf %50, %52 : vector<8x128xf32>
      %c0_38 = arith.constant 0 : index
      %c0_39 = arith.constant 0 : index
      %54 = vector.load %arg11[%c0_38, %c0_39] : memref<8x128xf32, #tpu.memory_space<vmem>>, vector<8x128xf32>
      tpu.vector_store %arg11[%c0_38, %c0_39], %53 {strides = array<i32>} : memref<8x128xf32, #tpu.memory_space<vmem>>, vector<8x128xf32>,
    } else {
    }
    %true = arith.constant true
    %16 = arith.xori %13, %true : i1
    %17 = arith.extui %16 : i1 to i32
    %c0_i32_8 = arith.constant 0 : i32
    %18 = arith.cmpi ne, %17, %c0_i32_8 : i32
    scf.if %18 {
      %22 = tpu.iota {dimensions = array<i32: 0>} : vector<16x128xi32>
      %23 = tpu.iota {dimensions = array<i32: 1>} : vector<16x128xi32>
      %c2048_i32_11 = arith.constant 2048 : i32
      %24 = arith.muli %10, %c2048_i32_11 : i32
      %c128_i32 = arith.constant 128 : i32
      %25 = vector.broadcast %c128_i32 : i32 to vector<16x128xi32>
      %26 = arith.muli %22, %25 : vector<16x128xi32>
      %27 = vector.broadcast %24 : i32 to vector<16x128xi32>
      %28 = arith.addi %27, %26 : vector<16x128xi32>
      %29 = arith.addi %28, %23 : vector<16x128xi32>
      %c2048_i32_12 = arith.constant 2048 : i32
      %30 = vector.broadcast %c2048_i32_12 : i32 to vector<16x128xi32>
      %31 = arith.cmpi slt, %29, %30 : vector<16x128xi32>
      %32 = arith.mulf %6, %6 : vector<16x128xf32>
      %cst = arith.constant 0.000000e+00 : f32
      %33 = vector.broadcast %cst : f32 to vector<16x128xf32>
      %34 = arith.select %31, %32, %33 : vector<16x128xi1>, vector<16x128xf32>
      %35 = math.absf %6 : vector<16x128xf32>
      %cst_13 = arith.constant 0.000000e+00 : f32
      %36 = vector.broadcast %cst_13 : f32 to vector<16x128xf32>
      %37 = arith.select %31, %35, %36 : vector<16x128xi1>, vector<16x128xf32>
      %cst_14 = arith.constant 0.000000e+00 : f32
      %38 = vector.broadcast %cst_14 : f32 to vector<16x128xf32>
      %39 = arith.select %31, %8, %38 : vector<16x128xi1>, vector<16x128xf32>
      %40 = arith.mulf %8, %8 : vector<16x128xf32>
      %cst_15 = arith.constant 0.000000e+00 : f32
      %41 = vector.broadcast %cst_15 : f32 to vector<16x128xf32>
      %42 = arith.select %31, %40, %41 : vector<16x128xi1>, vector<16x128xf32>
      %cst_16 = arith.constant 0xFF800000 : f32
      %43 = vector.broadcast %cst_16 : f32 to vector<16x128xf32>
      %44 = arith.select %31, %8, %43 : vector<16x128xi1>, vector<16x128xf32>
      %cst_17 = arith.constant 0x7F800000 : f32
      %45 = vector.broadcast %cst_17 : f32 to vector<16x128xf32>
      %46 = arith.select %31, %8, %45 : vector<16x128xi1>, vector<16x128xf32>
      %c0_18 = arith.constant 0 : index
      %c0_19 = arith.constant 0 : index
      %47 = vector.load %arg6[%c0_18, %c0_19] : memref<8x128xf32, #tpu.memory_space<vmem>>, vector<8x128xf32>
      %48 = vector.shape_cast %34 : vector<16x128xf32> to vector<2x8x128xf32>
      %cst_20 = arith.constant dense<0.000000e+00> : vector<8x128xf32>
      %49 = vector.multi_reduction <add>, %48, %cst_20 [0] : vector<2x8x128xf32> to vector<8x128xf32>
      %50 = arith.addf %47, %49 : vector<8x128xf32>
      %c0_21 = arith.constant 0 : index
      %c0_22 = arith.constant 0 : index
      %51 = vector.load %arg6[%c0_21, %c0_22] : memref<8x128xf32, #tpu.memory_space<vmem>>, vector<8x128xf32>
      tpu.vector_store %arg6[%c0_21, %c0_22], %50 {strides = array<i32>} : memref<8x128xf32, #tpu.memory_space<vmem>>, vector<8x128xf32>,
      %c0_23 = arith.constant 0 : index
      %c0_24 = arith.constant 0 : index
      %52 = vector.load %arg7[%c0_23, %c0_24] : memref<8x128xf32, #tpu.memory_space<vmem>>, vector<8x128xf32>
      %53 = vector.shape_cast %37 : vector<16x128xf32> to vector<2x8x128xf32>
      %cst_25 = arith.constant dense<0.000000e+00> : vector<8x128xf32>
      %54 = vector.multi_reduction <add>, %53, %cst_25 [0] : vector<2x8x128xf32> to vector<8x128xf32>
      %55 = arith.addf %52, %54 : vector<8x128xf32>
      %c0_26 = arith.constant 0 : index
      %c0_27 = arith.constant 0 : index
      %56 = vector.load %arg7[%c0_26, %c0_27] : memref<8x128xf32, #tpu.memory_space<vmem>>, vector<8x128xf32>
      tpu.vector_store %arg7[%c0_26, %c0_27], %55 {strides = array<i32>} : memref<8x128xf32, #tpu.memory_space<vmem>>, vector<8x128xf32>,
      %c0_28 = arith.constant 0 : index
      %c0_29 = arith.constant 0 : index
      %57 = vector.load %arg8[%c0_28, %c0_29] : memref<8x128xf32, #tpu.memory_space<vmem>>, vector<8x128xf32>
      %58 = vector.shape_cast %39 : vector<16x128xf32> to vector<2x8x128xf32>
      %cst_30 = arith.constant dense<0.000000e+00> : vector<8x128xf32>
      %59 = vector.multi_reduction <add>, %58, %cst_30 [0] : vector<2x8x128xf32> to vector<8x128xf32>
      %60 = arith.addf %57, %59 : vector<8x128xf32>
      %c0_31 = arith.constant 0 : index
      %c0_32 = arith.constant 0 : index
      %61 = vector.load %arg8[%c0_31, %c0_32] : memref<8x128xf32, #tpu.memory_space<vmem>>, vector<8x128xf32>
      tpu.vector_store %arg8[%c0_31, %c0_32], %60 {strides = array<i32>} : memref<8x128xf32, #tpu.memory_space<vmem>>, vector<8x128xf32>,
      %c0_33 = arith.constant 0 : index
      %c0_34 = arith.constant 0 : index
      %62 = vector.load %arg9[%c0_33, %c0_34] : memref<8x128xf32, #tpu.memory_space<vmem>>, vector<8x128xf32>
      %63 = vector.shape_cast %42 : vector<16x128xf32> to vector<2x8x128xf32>
      %cst_35 = arith.constant dense<0.000000e+00> : vector<8x128xf32>
      %64 = vector.multi_reduction <add>, %63, %cst_35 [0] : vector<2x8x128xf32> to vector<8x128xf32>
      %65 = arith.addf %62, %64 : vector<8x128xf32>
      %c0_36 = arith.constant 0 : index
      %c0_37 = arith.constant 0 : index
      %66 = vector.load %arg9[%c0_36, %c0_37] : memref<8x128xf32, #tpu.memory_space<vmem>>, vector<8x128xf32>
      tpu.vector_store %arg9[%c0_36, %c0_37], %65 {strides = array<i32>} : memref<8x128xf32, #tpu.memory_space<vmem>>, vector<8x128xf32>,
      %c0_38 = arith.constant 0 : index
      %c0_39 = arith.constant 0 : index
      %67 = vector.load %arg10[%c0_38, %c0_39] : memref<8x128xf32, #tpu.memory_space<vmem>>, vector<8x128xf32>
      %68 = vector.shape_cast %44 : vector<16x128xf32> to vector<2x8x128xf32>
      %cst_40 = arith.constant dense<0xFF800000> : vector<8x128xf32>
      %69 = vector.multi_reduction <maximumf>, %68, %cst_40 [0] : vector<2x8x128xf32> to vector<8x128xf32>
      %70 = arith.maximumf %67, %69 : vector<8x128xf32>
      %c0_41 = arith.constant 0 : index
      %c0_42 = arith.constant 0 : index
      %71 = vector.load %arg10[%c0_41, %c0_42] : memref<8x128xf32, #tpu.memory_space<vmem>>, vector<8x128xf32>
      tpu.vector_store %arg10[%c0_41, %c0_42], %70 {strides = array<i32>} : memref<8x128xf32, #tpu.memory_space<vmem>>, vector<8x128xf32>,
      %c0_43 = arith.constant 0 : index
      %c0_44 = arith.constant 0 : index
      %72 = vector.load %arg11[%c0_43, %c0_44] : memref<8x128xf32, #tpu.memory_space<vmem>>, vector<8x128xf32>
      %73 = vector.shape_cast %46 : vector<16x128xf32> to vector<2x8x128xf32>
      %cst_45 = arith.constant dense<0x7F800000> : vector<8x128xf32>
      %74 = vector.multi_reduction <minimumf>, %73, %cst_45 [0] : vector<2x8x128xf32> to vector<8x128xf32>
      %75 = arith.minimumf %72, %74 : vector<8x128xf32>
      %c0_46 = arith.constant 0 : index
      %c0_47 = arith.constant 0 : index
      %76 = vector.load %arg11[%c0_46, %c0_47] : memref<8x128xf32, #tpu.memory_space<vmem>>, vector<8x128xf32>
      tpu.vector_store %arg11[%c0_46, %c0_47], %75 {strides = array<i32>} : memref<8x128xf32, #tpu.memory_space<vmem>>, vector<8x128xf32>,
    } else {
    }
    %c0_i32_9 = arith.constant 0 : i32
    %19 = arith.cmpi eq, %arg1, %c0_i32_9 : i32
    %20 = arith.extui %19 : i1 to i32
    %c0_i32_10 = arith.constant 0 : i32
    %21 = arith.cmpi ne, %20, %c0_i32_10 : i32
    scf.if %21 {
      %c0_11 = arith.constant 0 : index
      %c0_12 = arith.constant 0 : index
      %22 = vector.load %arg6[%c0_11, %c0_12] : memref<8x128xf32, #tpu.memory_space<vmem>>, vector<8x128xf32>
      %c0_13 = arith.constant 0 : index
      %c0_14 = arith.constant 0 : index
      %c0_15 = arith.constant 0 : index
      %c0_16 = arith.constant 0 : index
      %23 = vector.load %arg5[%c0_13, %c0_14, %c0_15, %c0_16] : memref<1x6x8x128xf32, #tpu.memory_space<vmem>>, vector<1x1x8x128xf32>
      %24 = vector.shape_cast %23 : vector<1x1x8x128xf32> to vector<8x128xf32>
      %25 = vector.shape_cast %22 : vector<8x128xf32> to vector<1x1x8x128xf32>
      tpu.vector_store %arg5[%c0_13, %c0_14, %c0_15, %c0_16], %25 {strides = array<i32>} : memref<1x6x8x128xf32, #tpu.memory_space<vmem>>, vector<1x1x8x128xf32>,
      %c0_17 = arith.constant 0 : index
      %c0_18 = arith.constant 0 : index
      %26 = vector.load %arg7[%c0_17, %c0_18] : memref<8x128xf32, #tpu.memory_space<vmem>>, vector<8x128xf32>
      %c0_19 = arith.constant 0 : index
      %c1 = arith.constant 1 : index
      %c0_20 = arith.constant 0 : index
      %c0_21 = arith.constant 0 : index
      %27 = vector.load %arg5[%c0_19, %c1, %c0_20, %c0_21] : memref<1x6x8x128xf32, #tpu.memory_space<vmem>>, vector<1x1x8x128xf32>
      %28 = vector.shape_cast %27 : vector<1x1x8x128xf32> to vector<8x128xf32>
      %29 = vector.shape_cast %26 : vector<8x128xf32> to vector<1x1x8x128xf32>
      tpu.vector_store %arg5[%c0_19, %c1, %c0_20, %c0_21], %29 {strides = array<i32>} : memref<1x6x8x128xf32, #tpu.memory_space<vmem>>, vector<1x1x8x128xf32>,
      %c0_22 = arith.constant 0 : index
      %c0_23 = arith.constant 0 : index
      %30 = vector.load %arg8[%c0_22, %c0_23] : memref<8x128xf32, #tpu.memory_space<vmem>>, vector<8x128xf32>
      %c0_24 = arith.constant 0 : index
      %c2 = arith.constant 2 : index
      %c0_25 = arith.constant 0 : index
      %c0_26 = arith.constant 0 : index
      %31 = vector.load %arg5[%c0_24, %c2, %c0_25, %c0_26] : memref<1x6x8x128xf32, #tpu.memory_space<vmem>>, vector<1x1x8x128xf32>
      %32 = vector.shape_cast %31 : vector<1x1x8x128xf32> to vector<8x128xf32>
      %33 = vector.shape_cast %30 : vector<8x128xf32> to vector<1x1x8x128xf32>
      tpu.vector_store %arg5[%c0_24, %c2, %c0_25, %c0_26], %33 {strides = array<i32>} : memref<1x6x8x128xf32, #tpu.memory_space<vmem>>, vector<1x1x8x128xf32>,
      %c0_27 = arith.constant 0 : index
      %c0_28 = arith.constant 0 : index
      %34 = vector.load %arg9[%c0_27, %c0_28] : memref<8x128xf32, #tpu.memory_space<vmem>>, vector<8x128xf32>
      %c0_29 = arith.constant 0 : index
      %c3 = arith.constant 3 : index
      %c0_30 = arith.constant 0 : index
      %c0_31 = arith.constant 0 : index
      %35 = vector.load %arg5[%c0_29, %c3, %c0_30, %c0_31] : memref<1x6x8x128xf32, #tpu.memory_space<vmem>>, vector<1x1x8x128xf32>
      %36 = vector.shape_cast %35 : vector<1x1x8x128xf32> to vector<8x128xf32>
      %37 = vector.shape_cast %34 : vector<8x128xf32> to vector<1x1x8x128xf32>
      tpu.vector_store %arg5[%c0_29, %c3, %c0_30, %c0_31], %37 {strides = array<i32>} : memref<1x6x8x128xf32, #tpu.memory_space<vmem>>, vector<1x1x8x128xf32>,
      %c0_32 = arith.constant 0 : index
      %c0_33 = arith.constant 0 : index
      %38 = vector.load %arg10[%c0_32, %c0_33] : memref<8x128xf32, #tpu.memory_space<vmem>>, vector<8x128xf32>
      %c0_34 = arith.constant 0 : index
      %c4 = arith.constant 4 : index
      %c0_35 = arith.constant 0 : index
      %c0_36 = arith.constant 0 : index
      %39 = vector.load %arg5[%c0_34, %c4, %c0_35, %c0_36] : memref<1x6x8x128xf32, #tpu.memory_space<vmem>>, vector<1x1x8x128xf32>
      %40 = vector.shape_cast %39 : vector<1x1x8x128xf32> to vector<8x128xf32>
      %41 = vector.shape_cast %38 : vector<8x128xf32> to vector<1x1x8x128xf32>
      tpu.vector_store %arg5[%c0_34, %c4, %c0_35, %c0_36], %41 {strides = array<i32>} : memref<1x6x8x128xf32, #tpu.memory_space<vmem>>, vector<1x1x8x128xf32>,
      %c0_37 = arith.constant 0 : index
      %c0_38 = arith.constant 0 : index
      %42 = vector.load %arg11[%c0_37, %c0_38] : memref<8x128xf32, #tpu.memory_space<vmem>>, vector<8x128xf32>
      %c0_39 = arith.constant 0 : index
      %c5 = arith.constant 5 : index
      %c0_40 = arith.constant 0 : index
      %c0_41 = arith.constant 0 : index
      %43 = vector.load %arg5[%c0_39, %c5, %c0_40, %c0_41] : memref<1x6x8x128xf32, #tpu.memory_space<vmem>>, vector<1x1x8x128xf32>
      %44 = vector.shape_cast %43 : vector<1x1x8x128xf32> to vector<8x128xf32>
      %45 = vector.shape_cast %42 : vector<8x128xf32> to vector<1x1x8x128xf32>
      tpu.vector_store %arg5[%c0_39, %c5, %c0_40, %c0_41], %45 {strides = array<i32>} : memref<1x6x8x128xf32, #tpu.memory_space<vmem>>, vector<1x1x8x128xf32>,
    } else {
    }
    return
  }
  func.func @transform_0(%arg0: i32, %arg1: i32) -> i32 {
    %c0_i32 = arith.constant 0 : i32
    %c0_i32_0 = arith.constant 0 : i32
    return %c0_i32 : i32
  }
  func.func @transform_1(%arg0: i32, %arg1: i32) -> (i32, i32) {
    %c1_i32 = arith.constant 1 : i32
    %0 = arith.muli %arg0, %c1_i32 : i32
    %1 = arith.addi %0, %arg1 : i32
    %c0_i32 = arith.constant 0 : i32
    %2 = arith.minsi %1, %c0_i32 : i32
    %c0_i32_0 = arith.constant 0 : i32
    %c0_i32_1 = arith.constant 0 : i32
    return %2, %c0_i32_0 : i32, i32
  }
  func.func @transform_2(%arg0: i32, %arg1: i32) -> (i32, i32) {
    %c1_i32 = arith.constant 1 : i32
    %0 = arith.muli %arg0, %c1_i32 : i32
    %1 = arith.addi %0, %arg1 : i32
    %c0_i32 = arith.constant 0 : i32
    %2 = arith.minsi %1, %c0_i32 : i32
    %c0_i32_0 = arith.constant 0 : i32
    %c0_i32_1 = arith.constant 0 : i32
    return %2, %c0_i32_0 : i32, i32
  }
  func.func @transform_3(%arg0: i32, %arg1: i32) -> (i32, i32, i32, i32) {
    %c0_i32 = arith.constant 0 : i32
    %c0_i32_0 = arith.constant 0 : i32
    %c0_i32_1 = arith.constant 0 : i32
    %c0_i32_2 = arith.constant 0 : i32
    return %arg0, %c0_i32, %c0_i32_0, %c0_i32_1 : i32, i32, i32, i32
  }
}

</mosaic_0001>

<bundles_post_ra>
// kernel: tpu_custom_call.1
= control target key start
LH: loop header
LB: loop body
LE: loop exit
PB: predicated region body
PF: predicated region fallthrough
CT: control target
= control target key end

     0   :  { %9 = vsyncpa [#allocation10], 0  ;;  %s374_s0 = inlined_call_operand.<no memory space> [shape: f32[1], index: 0, kind: input, shape index: {}]   ;;  %s375_s1 = inlined_call_operand.hbm [shape: f32[16,128], index: 1, kind: input, shape index: {}]   ;;  %s376_s2 = inlined_call_operand.hbm [shape: f32[16,128], index: 2, kind: input, shape index: {}]   ;;  %s377_s3 = inlined_call_operand.hbm [shape: f32[1,6,8,128], index: 3, kind: output, shape index: {}]  }
   0x1   :  { %10 = vsyncpa [#allocation13], 0 }
   0x2   :  { %11 = vsyncpa [#allocation11], 0  ;;  %s301_s12 = smov [#allocation9]   ;;  %s229_s16 = scalar_lea.hbm %s375_s1, 256 }
   0x3   :  { %s25_s13 = sshll.u32 %s301_s12, 4  ;;  %p230_p0 = scmp.ne.s32.totalorder %s375_s1, %s229_s16  ;;  %s26_s13 = int_to_ptr.vmem [resolvable:$true] %s25_s13 }
   0x4   :  { %p233_p1 = scmp.lt.u32.totalorder %s229_s16, %s375_s1 }
   0x6   :  { %p235_p2 = pnand %p233_p1, %p230_p0 }
   0x8   :  { %238 = shalt.err (!%p235_p2)
}
   0x9   :  { %s239_s21 = scalar_lea.vmem %s26_s13, 256  ;;  %p244_p4 = scmp.lt.s32.totalorder %s26_s13, %s26_s13 }
   0xa   :  { %p240_p3 = scmp.ne.s32.totalorder %s26_s13, %s239_s21  ;;  %p245_p5 = scmp.lt.s32.totalorder %s239_s21, %s239_s21 }
   0xc   :  { %p246_p6 = por %p245_p5, %p244_p4 }
   0xe   :  { %p247_p7 = pnand %p246_p6, %p240_p3 }
  0x10   :  { %250 = shalt.err (!%p247_p7)
}
  0x11   :  { %s302_s22 = smov 128   ;;  %s303_s23 = smov 8  }
  0x12   :  { %31 = dma.hbm_to_vmem [thread:$0]  %s375_s1, 256, %s26_s13, [#allocation10], %s302_s22, %s302_s22, %s303_s23  }
  0x13   :  { %s304_s26 = smov [#allocation12]   ;;  %s251_s30 = scalar_lea.hbm %s376_s2, 256 }
  0x14   :  { %s43_s27 = sshll.u32 %s304_s26, 4  ;;  %p252_p8 = scmp.ne.s32.totalorder %s376_s2, %s251_s30  ;;  %s44_s27 = int_to_ptr.vmem [resolvable:$true] %s43_s27 }
  0x15   :  { %p255_p9 = scmp.lt.u32.totalorder %s251_s30, %s376_s2 }
  0x17   :  { %p257_p10 = pnand %p255_p9, %p252_p8 }
  0x19   :  { %260 = shalt.err (!%p257_p10)
}
  0x1a   :  { %s261_s8 = scalar_lea.vmem %s44_s27, 256  ;;  %p266_p12 = scmp.lt.s32.totalorder %s44_s27, %s44_s27 }
  0x1b   :  { %p262_p11 = scmp.ne.s32.totalorder %s44_s27, %s261_s8  ;;  %p267_p13 = scmp.lt.s32.totalorder %s261_s8, %s261_s8 }
  0x1d   :  { %p268_p0 = por %p267_p13, %p266_p12 }
  0x1f   :  { %p269_p1 = pnand %p268_p0, %p262_p11 }
  0x21   :  { %272 = shalt.err (!%p269_p1)
}
  0x22   :  { %49 = dma.hbm_to_vmem [thread:$0]  %s376_s2, 256, %s44_s27, [#allocation13], %s302_s22, %s302_s22, %s303_s23  }
  0x23   :  { %295 = dma.done.wait [#allocation10], 256  }
  0x24   :  { %296 = vsyncadd [#allocation10], 4294967040 }
  0x25   :  { %297 = dma.done.wait [#allocation13], 256  }
  0x26   :  { %298 = vsyncadd [#allocation13], 4294967040  ;;  %v81_v0 = vstv %s374_s0  ;;  %v74_v1 = vld [vmem:[#allocation9] sm:$0xff]  ;;  %v75_v2 = vld [vmem:[#allocation9 + $0x8] sm:$0xff]  ;;  %s305_s2 = smov [#allocation14]  }
  0x27   :  { %v76_v3 = vld [vmem:[#allocation12] sm:$0xff]  ;;  %v77_v4 = vld [vmem:[#allocation12 + $0x8] sm:$0xff]  ;;  %v82_v6 = vsub.f32 %v74_v1, %v81_v0  ;;  %v83_v7 = vsub.f32 %v75_v2, %v81_v0  ;;  %s207_s12 = sshll.u32 %s305_s2, 4  ;;  %s208_s12 = int_to_ptr.vmem [resolvable:$true] %s207_s12 }
  0x28   :  { %v79_v5 = vsub.f32 %v74_v1, %v76_v3  ;;  %v80_v8 = vsub.f32 %v75_v2, %v77_v4  ;;  %s273_s0 = scalar_lea.vmem %s208_s12, 768  ;;  %p278_p3 = scmp.lt.s32.totalorder %s208_s12, %s208_s12 }
  0x29   :  { %v106_v11 = vadd.f32 %v83_v7, %v82_v6  ;;  %v95_v12 = vmul.f32 %v82_v6, %v82_v6  ;;  %v96_v15 = vmul.f32 %v83_v7, %v83_v7  ;;  %v114_v16 = vmax.f32 %v82_v6, %v83_v7  ;;  %p274_p2 = scmp.ne.s32.totalorder %s208_s12, %s273_s0  ;;  %p279_p4 = scmp.lt.s32.totalorder %s273_s0, %s273_s0 }
  0x2a   :  { %v91_v9 = vmul.f32 %v79_v5, %v79_v5  ;;  %v93_v10 = vand.u32 2147483647, %v79_v5  ;;  %v92_v13 = vmul.f32 %v80_v8, %v80_v8  ;;  %v94_v14 = vand.u32 2147483647, %v80_v8 }
  0x2b   :  { %192 = vst [vmem:[#allocation14 + $0x10] sm:$0xff] %v106_v11  ;;  %v118_v17 = vmin.f32 %v82_v6, %v83_v7  ;;  %v110_v20 = vadd.f32 %v96_v15, %v95_v12  ;;  %198 = vst [vmem:[#allocation14 + $0x20] sm:$0xff] %v114_v16  ;;  %p280_p5 = por %p279_p4, %p278_p3 }
  0x2c   :  { %v98_v18 = vadd.f32 %v92_v13, %v91_v9  ;;  %v102_v19 = vadd.f32 %v94_v14, %v93_v10 }
  0x2d   :  { %201 = vst [vmem:[#allocation14 + $0x28] sm:$0xff] %v118_v17  ;;  %195 = vst [vmem:[#allocation14 + $0x18] sm:$0xff] %v110_v20  ;;  %p281_p6 = pnand %p280_p5, %p274_p2 }
  0x2e   :  { %186 = vst [vmem:[#allocation14] sm:$0xff] %v98_v18  ;;  %189 = vst [vmem:[#allocation14 + $0x8] sm:$0xff] %v102_v19 }
  0x2f   :  { %284 = shalt.err (!%p281_p6)
}
  0x30   :  { %s285_s15 = scalar_lea.hbm %s377_s3, 768 }
  0x31   :  { %p286_p7 = scmp.ne.s32.totalorder %s377_s3, %s285_s15  ;;  %p289_p8 = scmp.lt.u32.totalorder %s285_s15, %s377_s3 }
  0x33   :  { %p291_p9 = pnand %p289_p8, %p286_p7 }
  0x35   :  { %294 = shalt.err (!%p291_p9)
}
  0x36   :  { %213 = dma.vmem_to_hbm [thread:$0]  %s208_s12, 768, %s377_s3, [#allocation11], %s302_s22, %s302_s22, %s303_s23  }
  0x37   :  { %299 = dma.done.wait [#allocation11], 768  }
  0x38   :  { %300 = vsyncadd [#allocation11], 4294966528 }
  0x39   :  { %217 = vsyncpa [#allocation10], 1 }
  0x3a   :  { %218 = vsyncpa [#allocation13], 1 }
  0x3b   :  { %219 = vsyncpa [#allocation11], 1 }

</bundles_post_ra>
